<compile_context>
chip_gen: v6e
topology: v6e:2x2x1
jax: 0.10.0
libtpu: 0.0.40
codegen_flags: <defaults>
</compile_context>

<pallas_src>
import functools

import jax
import jax.numpy as jnp
from jax.experimental import pallas as pl
from jax.experimental.pallas import tpu as pltpu


def _prompt_pool_kernel(q_ref, keys_ref, k2_ref, vals_ref,
                        quant_ref, loss_ref, onehot_ref, *, top_k, b_real):
    q = q_ref[...]              # [Bp, D]   (native dtype)
    keys = keys_ref[...]        # [P, D]    (native dtype)
    k2 = k2_ref[...]            # [1, P]    f32, precomputed ||k||^2

    Bp, _ = q.shape
    P = keys.shape[0]

    # -2 * q.k via a single MXU matmul; the -2 scale rides on the [Bp, D]
    # operand instead of the [Bp, P] result.
    neg2qk = jax.lax.dot_general(
        q * jnp.asarray(-2.0, q.dtype), keys,
        (((1,), (1,)), ((), ())), preferred_element_type=jnp.float32)  # [Bp, P]

    # Selection score (squared distance minus ||q||^2; argmin unchanged).
    s = neg2qk + k2                                                    # [Bp, P]

    # ||q||^2 is only needed for the loss on the selected minima.
    qf = q.astype(jnp.float32)
    q2 = jnp.sum(qf * qf, axis=1, keepdims=True)                       # [Bp, 1]

    iota_p = jax.lax.broadcasted_iota(jnp.int32, (Bp, P), 1)
    big = jnp.float32(1e30)   # finite sentinel (avoids inf propagation)

    d_sum = jnp.zeros((Bp, 1), dtype=jnp.float32)
    for k in range(top_k):
        minval = jnp.min(s, axis=1, keepdims=True)                     # [Bp, 1]
        is_min = s <= minval
        # first-occurrence index of the minimum (torch.topk tie order)
        idx = jnp.min(jnp.where(is_min, iota_p, P), axis=1, keepdims=True)
        sel = iota_p == idx                                            # [Bp, P]
        # stage this rank's one-hot rows into the staging buffer (full slab)
        onehot_ref[pl.ds(k * Bp, Bp), :] = sel.astype(onehot_ref.dtype)
        # true euclidean distance only on the selected [Bp, 1] minima
        d_sum = d_sum + jnp.sqrt(jnp.maximum(minval + q2, 0.0))
        # mask the selected entry for the next round (reuse `sel`)
        s = jnp.where(sel, big, s)

    # One fused one-hot gather for all ranks: [top_k*Bp, P] @ [P, L*D] (MXU).
    gathered = jax.lax.dot_general(
        onehot_ref[...], vals_ref[...],
        (((1,), (0,)), ((), ())), preferred_element_type=jnp.float32)
    quant_ref[...] = gathered.astype(quant_ref.dtype)                  # full slab

    # key_loss = sum(top-k distances over the *real* batch rows) / B
    if b_real != Bp:
        row_mask = (jax.lax.broadcasted_iota(jnp.int32, (Bp, 1), 0)
                    < b_real).astype(jnp.float32)
        d_sum = d_sum * row_mask
    loss_ref[...] = jnp.sum(d_sum, axis=0, keepdims=True) / jnp.float32(b_real)


def prompt_pool_forward(query, prompt_keys, prompt_values, top_k):
    """query: [B, D]; prompt_keys: [P, D]; prompt_values: [P, L, D]."""
    B, D = query.shape
    P, L, D2 = prompt_values.shape
    assert D == D2
    assert top_k <= P

    vals_flat = prompt_values.reshape(P, L * D)

    # Precompute ||k||^2 once (cheap XLA reduction) as a lane-dense [1, P] row.
    k2 = jnp.sum(prompt_keys.astype(jnp.float32) ** 2, axis=1)[None, :]

    # Pad the batch up to a sublane multiple (8) so every VPU/XLU op is
    # full-vreg and every store is unmasked; padded rows are masked in the
    # loss and sliced off below.
    B_pad = ((B + 7) // 8) * 8
    if B_pad != B:
        q_pad = jnp.pad(query, ((0, B_pad - B), (0, 0)))
    else:
        q_pad = query

    kernel = functools.partial(_prompt_pool_kernel, top_k=top_k, b_real=B)
    quant_flat, loss = pl.pallas_call(
        kernel,
        grid=(1,),
        in_specs=[
            pl.BlockSpec((B_pad, D), lambda i: (0, 0)),
            pl.BlockSpec((P, D), lambda i: (0, 0)),
            pl.BlockSpec((1, P), lambda i: (0, 0)),
            pl.BlockSpec((P, L * D), lambda i: (0, 0)),
        ],
        out_specs=[
            # lane/sublane-dense contiguous output slab: [top_k*B_pad, L*D]
            pl.BlockSpec((top_k * B_pad, L * D), lambda i: (0, 0)),
            pl.BlockSpec((1, 1), lambda i: (0, 0)),
        ],
        out_shape=[
            jax.ShapeDtypeStruct((top_k * B_pad, L * D), query.dtype),
            jax.ShapeDtypeStruct((1, 1), jnp.float32),
        ],
        scratch_shapes=[
            # staging buffer for the fused one-hot gather
            pltpu.VMEM((top_k * B_pad, P), vals_flat.dtype),
        ],
        compiler_params=pltpu.CompilerParams(
            dimension_semantics=("arbitrary",)),
    )(q_pad, prompt_keys, k2, vals_flat)

    # [top_k*B_pad, L*D] -> [top_k, B_pad, L, D] -> [B, top_k, L, D]
    quant = quant_flat.reshape(top_k, B_pad, L, D)[:, :B]
    quantized_values = jnp.transpose(quant, (1, 0, 2, 3))
    key_loss = loss[0, 0]
    return quantized_values, key_loss


def _kaiming_uniform(key, shape):
    # nn.init.kaiming_uniform_ (a=0, fan_in): bound = sqrt(6 / fan_in)
    fan_in = 1
    for s in shape[1:]:
        fan_in *= s
    bound = (6.0 / fan_in) ** 0.5
    return jax.random.uniform(key, shape, jnp.float32, -bound, bound)


def _reference_forward(query, prompt_keys, prompt_values, top_k):
    # plain-JAX reference of the PyTorch forward (euclidean branch)
    diff = query[:, None, :] - prompt_keys[None, :, :]
    dist = jnp.sqrt(jnp.sum(diff * diff, axis=-1))                    # [B, P]
    neg_vals, idx = jax.lax.top_k(-dist, top_k)                       # smallest
    top_vals = -neg_vals
    quant = prompt_values[idx]                                        # [B, k, L, D]
    key_loss = jnp.sum(top_vals) / query.shape[0]
    return quant, key_loss


if __name__ == "__main__":
    # Small shapes consistent with the module: embedding_dim=32, pool_size=8,
    # length=4, top_k=2, batch=4.
    B, D, P, L, TOP_K = 4, 32, 8, 4, 2

    key = jax.random.PRNGKey(0)
    k_q, k_keys, k_vals = jax.random.split(key, 3)

    query = jax.random.normal(k_q, (B, D), dtype=jnp.float32)
    prompt_keys = _kaiming_uniform(k_keys, (P, D))
    prompt_values = _kaiming_uniform(k_vals, (P, L, D))

    quant, key_loss = prompt_pool_forward(query, prompt_keys, prompt_values, TOP_K)
    quant = jax.block_until_ready(quant)
    key_loss = jax.block_until_ready(key_loss)

    ref_quant, ref_loss = _reference_forward(query, prompt_keys, prompt_values, TOP_K)
    assert quant.shape == (B, TOP_K, L, D)
    assert jnp.allclose(quant, ref_quant, atol=1e-4), "quantized values mismatch"
    assert jnp.allclose(key_loss, ref_loss, atol=1e-4), "key loss mismatch"

    print("KERNEL_OK")
</pallas_src>

<mosaic_0001>
module attributes {stable_mosaic.version = 11 : i64} {
  func.func @_prompt_pool_kernel(%arg0: i32, %arg1: memref<8x32xf32, #tpu.memory_space<vmem>>, %arg2: memref<8x32xf32, #tpu.memory_space<vmem>>, %arg3: memref<1x8xf32, #tpu.memory_space<vmem>>, %arg4: memref<8x128xf32, #tpu.memory_space<vmem>>, %arg5: memref<16x128xf32, #tpu.memory_space<vmem>>, %arg6: memref<1x1xf32, #tpu.memory_space<vmem>>, %arg7: memref<16x8xf32, #tpu.memory_space<vmem>>) attributes {dimension_semantics = [#tpu.dimension_semantics<arbitrary>], iteration_bounds = array<i64: 1>, scalar_prefetch = 0 : i64, scratch_operands = 1 : i64, tpu.core_type = #tpu.core_type<tc>, window_params = [{pipeline_mode = #tpu.pipeline_mode<synchronous>, transform_indices = @transform_0, window_bounds = array<i64: 8, 32>}, {pipeline_mode = #tpu.pipeline_mode<synchronous>, transform_indices = @transform_1, window_bounds = array<i64: 8, 32>}, {pipeline_mode = #tpu.pipeline_mode<synchronous>, transform_indices = @transform_2, window_bounds = array<i64: 1, 8>}, {pipeline_mode = #tpu.pipeline_mode<synchronous>, transform_indices = @transform_3, window_bounds = array<i64: 8, 128>}, {pipeline_mode = #tpu.pipeline_mode<synchronous>, transform_indices = @transform_4, window_bounds = array<i64: 16, 128>}, {pipeline_mode = #tpu.pipeline_mode<synchronous>, transform_indices = @transform_5, window_bounds = array<i64: 1, 1>}]} {
    %c0 = arith.constant 0 : index
    %c0_0 = arith.constant 0 : index
    %0 = vector.load %arg1[%c0, %c0_0] : memref<8x32xf32, #tpu.memory_space<vmem>>, vector<8x32xf32>
    %c0_1 = arith.constant 0 : index
    %c0_2 = arith.constant 0 : index
    %1 = vector.load %arg2[%c0_1, %c0_2] : memref<8x32xf32, #tpu.memory_space<vmem>>, vector<8x32xf32>
    %c0_3 = arith.constant 0 : index
    %c0_4 = arith.constant 0 : index
    %2 = vector.load %arg3[%c0_3, %c0_4] : memref<1x8xf32, #tpu.memory_space<vmem>>, vector<1x8xf32>
    %cst = arith.constant -2.000000e+00 : f32
    %3 = vector.broadcast %cst : f32 to vector<8x32xf32>
    %4 = arith.mulf %0, %3 : vector<8x32xf32>
    %cst_5 = arith.constant dense<0.000000e+00> : vector<8x8xf32>
    %5 = tpu.matmul %4, %1, %cst_5 {dimension_numbers = #tpu.dot_dimension_numbers<[1], [1], [0], [0], [0, 0, 1, 0], [], []>} : vector<8x32xf32>, vector<8x32xf32>, vector<8x8xf32> -> vector<8x8xf32>
    %6 = vector.broadcast %2 : vector<1x8xf32> to vector<8x8xf32>
    %7 = arith.addf %5, %6 : vector<8x8xf32>
    %8 = arith.mulf %0, %0 : vector<8x32xf32>
    %cst_6 = arith.constant dense<0.000000e+00> : vector<8xf32>
    %9 = vector.multi_reduction <add>, %8, %cst_6 [1] : vector<8x32xf32> to vector<8xf32>
    %10 = vector.shape_cast %9 : vector<8xf32> to vector<8x1xf32>
    %11 = tpu.iota {dimensions = array<i32: 1>} : vector<8x8xi32>
    %cst_7 = arith.constant 0.000000e+00 : f32
    %12 = vector.broadcast %cst_7 : f32 to vector<8x1xf32>
    %cst_8 = arith.constant dense<0x7F800000> : vector<8xf32>
    %13 = vector.multi_reduction <minimumf>, %7, %cst_8 [1] : vector<8x8xf32> to vector<8xf32>
    %14 = vector.shape_cast %13 : vector<8xf32> to vector<8x1xf32>
    %15 = vector.broadcast %14 : vector<8x1xf32> to vector<8x8xf32>
    %16 = arith.cmpf ole, %7, %15 : vector<8x8xf32>
    %c8_i32 = arith.constant 8 : i32
    %17 = vector.broadcast %c8_i32 : i32 to vector<8x8xi32>
    %18 = arith.select %16, %11, %17 : vector<8x8xi1>, vector<8x8xi32>
    %cst_9 = arith.constant dense<2147483647> : vector<8xi32>
    %19 = vector.multi_reduction <minsi>, %18, %cst_9 [1] : vector<8x8xi32> to vector<8xi32>
    %20 = vector.shape_cast %19 : vector<8xi32> to vector<8x1xi32>
    %21 = vector.broadcast %20 : vector<8x1xi32> to vector<8x8xi32>
    %22 = arith.cmpi eq, %11, %21 : vector<8x8xi32>
    %23 = arith.extui %22 : vector<8x8xi1> to vector<8x8xi32>
    %24 = arith.sitofp %23 : vector<8x8xi32> to vector<8x8xf32>
    %c0_10 = arith.constant 0 : index
    %c0_11 = arith.constant 0 : index
    %25 = vector.load %arg7[%c0_10, %c0_11] : memref<16x8xf32, #tpu.memory_space<vmem>>, vector<8x8xf32>
    tpu.vector_store %arg7[%c0_10, %c0_11], %24 {strides = array<i32>} : memref<16x8xf32, #tpu.memory_space<vmem>>, vector<8x8xf32>,
    %26 = arith.addf %14, %10 : vector<8x1xf32>
    %cst_12 = arith.constant 0.000000e+00 : f32
    %27 = vector.broadcast %cst_12 : f32 to vector<8x1xf32>
    %28 = arith.maximumf %26, %27 : vector<8x1xf32>
    %29 = math.sqrt %28 : vector<8x1xf32>
    %30 = arith.addf %12, %29 : vector<8x1xf32>
    %cst_13 = arith.constant 1.000000e+30 : f32
    %31 = vector.broadcast %cst_13 : f32 to vector<8x8xf32>
    %32 = arith.select %22, %31, %7 : vector<8x8xi1>, vector<8x8xf32>
    %cst_14 = arith.constant dense<0x7F800000> : vector<8xf32>
    %33 = vector.multi_reduction <minimumf>, %32, %cst_14 [1] : vector<8x8xf32> to vector<8xf32>
    %34 = vector.shape_cast %33 : vector<8xf32> to vector<8x1xf32>
    %35 = vector.broadcast %34 : vector<8x1xf32> to vector<8x8xf32>
    %36 = arith.cmpf ole, %32, %35 : vector<8x8xf32>
    %c8_i32_15 = arith.constant 8 : i32
    %37 = vector.broadcast %c8_i32_15 : i32 to vector<8x8xi32>
    %38 = arith.select %36, %11, %37 : vector<8x8xi1>, vector<8x8xi32>
    %cst_16 = arith.constant dense<2147483647> : vector<8xi32>
    %39 = vector.multi_reduction <minsi>, %38, %cst_16 [1] : vector<8x8xi32> to vector<8xi32>
    %40 = vector.shape_cast %39 : vector<8xi32> to vector<8x1xi32>
    %41 = vector.broadcast %40 : vector<8x1xi32> to vector<8x8xi32>
    %42 = arith.cmpi eq, %11, %41 : vector<8x8xi32>
    %43 = arith.extui %42 : vector<8x8xi1> to vector<8x8xi32>
    %44 = arith.sitofp %43 : vector<8x8xi32> to vector<8x8xf32>
    %c8 = arith.constant 8 : index
    %c0_17 = arith.constant 0 : index
    %45 = vector.load %arg7[%c8, %c0_17] : memref<16x8xf32, #tpu.memory_space<vmem>>, vector<8x8xf32>
    tpu.vector_store %arg7[%c8, %c0_17], %44 {strides = array<i32>} : memref<16x8xf32, #tpu.memory_space<vmem>>, vector<8x8xf32>,
    %46 = arith.addf %34, %10 : vector<8x1xf32>
    %cst_18 = arith.constant 0.000000e+00 : f32
    %47 = vector.broadcast %cst_18 : f32 to vector<8x1xf32>
    %48 = arith.maximumf %46, %47 : vector<8x1xf32>
    %49 = math.sqrt %48 : vector<8x1xf32>
    %50 = arith.addf %30, %49 : vector<8x1xf32>
    %c0_19 = arith.constant 0 : index
    %c0_20 = arith.constant 0 : index
    %51 = vector.load %arg7[%c0_19, %c0_20] : memref<16x8xf32, #tpu.memory_space<vmem>>, vector<16x8xf32>
    %c0_21 = arith.constant 0 : index
    %c0_22 = arith.constant 0 : index
    %52 = vector.load %arg4[%c0_21, %c0_22] : memref<8x128xf32, #tpu.memory_space<vmem>>, vector<8x128xf32>
    %cst_23 = arith.constant dense<0.000000e+00> : vector<16x128xf32>
    %53 = tpu.matmul %51, %52, %cst_23 {dimension_numbers = #tpu.dot_dimension_numbers<[1], [0], [0], [1], [0, 0, 1, 1], [], []>} : vector<16x8xf32>, vector<8x128xf32>, vector<16x128xf32> -> vector<16x128xf32>
    %c0_24 = arith.constant 0 : index
    %c0_25 = arith.constant 0 : index
    %54 = vector.load %arg5[%c0_24, %c0_25] : memref<16x128xf32, #tpu.memory_space<vmem>>, vector<16x128xf32>
    tpu.vector_store %arg5[%c0_24, %c0_25], %53 {strides = array<i32>} : memref<16x128xf32, #tpu.memory_space<vmem>>, vector<16x128xf32>,
    %55 = tpu.iota {dimensions = array<i32: 0>} : vector<8x1xi32>
    %c4_i32 = arith.constant 4 : i32
    %56 = vector.broadcast %c4_i32 : i32 to vector<8x1xi32>
    %57 = arith.cmpi slt, %55, %56 : vector<8x1xi32>
    %58 = arith.extui %57 : vector<8x1xi1> to vector<8x1xi32>
    %59 = arith.sitofp %58 : vector<8x1xi32> to vector<8x1xf32>
    %60 = arith.mulf %50, %59 : vector<8x1xf32>
    %cst_26 = arith.constant dense<0.000000e+00> : vector<1xf32>
    %61 = vector.multi_reduction <add>, %60, %cst_26 [0] : vector<8x1xf32> to vector<1xf32>
    %62 = vector.shape_cast %61 : vector<1xf32> to vector<1x1xf32>
    %cst_27 = arith.constant 4.000000e+00 : f32
    %63 = vector.broadcast %cst_27 : f32 to vector<1x1xf32>
    %64 = arith.divf %62, %63 : vector<1x1xf32>
    %c0_28 = arith.constant 0 : index
    %c0_29 = arith.constant 0 : index
    %65 = vector.load %arg6[%c0_28, %c0_29] : memref<1x1xf32, #tpu.memory_space<vmem>>, vector<1x1xf32>
    tpu.vector_store %arg6[%c0_28, %c0_29], %64 {strides = array<i32>} : memref<1x1xf32, #tpu.memory_space<vmem>>, vector<1x1xf32>,
    return
  }
  func.func @transform_0(%arg0: i32) -> (i32, i32) {
    %c0_i32 = arith.constant 0 : i32
    %c0_i32_0 = arith.constant 0 : i32
    %c0_i32_1 = arith.constant 0 : i32
    return %c0_i32, %c0_i32_0 : i32, i32
  }
  func.func @transform_1(%arg0: i32) -> (i32, i32) {
    %c0_i32 = arith.constant 0 : i32
    %c0_i32_0 = arith.constant 0 : i32
    %c0_i32_1 = arith.constant 0 : i32
    return %c0_i32, %c0_i32_0 : i32, i32
  }
  func.func @transform_2(%arg0: i32) -> (i32, i32) {
    %c0_i32 = arith.constant 0 : i32
    %c0_i32_0 = arith.constant 0 : i32
    %c0_i32_1 = arith.constant 0 : i32
    return %c0_i32, %c0_i32_0 : i32, i32
  }
  func.func @transform_3(%arg0: i32) -> (i32, i32) {
    %c0_i32 = arith.constant 0 : i32
    %c0_i32_0 = arith.constant 0 : i32
    %c0_i32_1 = arith.constant 0 : i32
    return %c0_i32, %c0_i32_0 : i32, i32
  }
  func.func @transform_4(%arg0: i32) -> (i32, i32) {
    %c0_i32 = arith.constant 0 : i32
    %c0_i32_0 = arith.constant 0 : i32
    %c0_i32_1 = arith.constant 0 : i32
    return %c0_i32, %c0_i32_0 : i32, i32
  }
  func.func @transform_5(%arg0: i32) -> (i32, i32) {
    %c0_i32 = arith.constant 0 : i32
    %c0_i32_0 = arith.constant 0 : i32
    %c0_i32_1 = arith.constant 0 : i32
    return %c0_i32, %c0_i32_0 : i32, i32
  }
}

</mosaic_0001>

<bundles_post_ra>
// kernel: tpu_custom_call.1
= control target key start
LH: loop header
LB: loop body
LE: loop exit
PB: predicated region body
PF: predicated region fallthrough
CT: control target
= control target key end

     0   :  { %11 = vsyncpa [#allocation4], 0  ;;  %s576_s0 = inlined_call_operand.hbm [shape: f32[8,32], index: 0, kind: input, shape index: {}]   ;;  %s577_s1 = inlined_call_operand.hbm [shape: f32[8,32], index: 1, kind: input, shape index: {}]   ;;  %s578_s2 = inlined_call_operand.vmem [shape: f32[1,8], index: 2, kind: input, shape index: {}]   ;;  %s579_s3 = inlined_call_operand.hbm [shape: f32[8,128], index: 3, kind: input, shape index: {}]   ;;  %s580_s4 = inlined_call_operand.hbm [shape: f32[16,128], index: 4, kind: output, shape index: {0}]   ;;  %s581_s5 = inlined_call_operand.hbm [shape: f32[1,1], index: 5, kind: output, shape index: {1}]  }
   0x1   :  { %12 = vsyncpa [#allocation7], 0 }
   0x2   :  { %13 = vsyncpa [#allocation5], 0 }
   0x3   :  { %14 = vsyncpa [#allocation11], 0  ;;  %s497_s18 = smov [#allocation6]   ;;  %s498_s20 = smov [#allocation3]  }
   0x4   :  { %s31_s19 = sshll.u32 %s497_s18, 4  ;;  %s21_s21 = sshll.u32 %s498_s20, 4  ;;  %s32_s19 = int_to_ptr.vmem [resolvable:$true] %s31_s19  ;;  %s22_s21 = int_to_ptr.vmem [resolvable:$true] %s21_s21 }
   0x5   :  { %s397_s22 = scalar_lea.vmem %s32_s19, 128  ;;  %p402_p1 = scmp.lt.s32.totalorder %s32_s19, %s32_s19 }
   0x6   :  { %p398_p0 = scmp.ne.s32.totalorder %s32_s19, %s397_s22  ;;  %p403_p2 = scmp.lt.s32.totalorder %s397_s22, %s397_s22 }
   0x8   :  { %p404_p3 = por %p403_p2, %p402_p1 }
   0xa   :  { %p405_p4 = pnand %p404_p3, %p398_p0 }
   0xc   :  { %408 = shalt.err (!%p405_p4)
}
   0xd   :  { %34 = dma.hbm_to_vmem [thread:$0]  %s577_s1, 128, %s32_s19, [#allocation7]  }
   0xe   :  { %s417_s25 = scalar_lea.vmem %s22_s21, 128  ;;  %p422_p6 = scmp.lt.s32.totalorder %s22_s21, %s22_s21 }
   0xf   :  { %p418_p5 = scmp.ne.s32.totalorder %s22_s21, %s417_s25  ;;  %p423_p7 = scmp.lt.s32.totalorder %s417_s25, %s417_s25 }
  0x11   :  { %p424_p8 = por %p423_p7, %p422_p6 }
  0x13   :  { %p425_p9 = pnand %p424_p8, %p418_p5 }
  0x15   :  { %428 = shalt.err (!%p425_p9)
}
  0x16   :  { %24 = dma.hbm_to_vmem [thread:$0]  %s576_s0, 128, %s22_s21, [#allocation4]  }
  0x17   :  { %s499_s28 = smov [#allocation8]  }
  0x18   :  { %s43_s29 = sshll.u32 %s499_s28, 4  ;;  %s44_s29 = int_to_ptr.vmem [resolvable:$true] %s43_s29 }
  0x19   :  { %s437_s30 = scalar_lea.vmem %s44_s29, 128  ;;  %p442_p11 = scmp.lt.s32.totalorder %s44_s29, %s44_s29 }
  0x1a   :  { %p438_p10 = scmp.ne.s32.totalorder %s44_s29, %s437_s30  ;;  %p443_p12 = scmp.lt.s32.totalorder %s437_s30, %s437_s30 }
  0x1c   :  { %p444_p13 = por %p443_p12, %p442_p11 }
  0x1e   :  { %p445_p0 = pnand %p444_p13, %p438_p10 }
  0x20   :  { %448 = shalt.err (!%p445_p0)
}
  0x21   :  { %46 = dma.hbm_to_vmem [thread:$0]  %s579_s3, 128, %s44_s29, [#allocation7]  }
  0x22   :  { %489 = dma.done.wait [#allocation4], 128  }
  0x23   :  { %490 = vsyncadd [#allocation4], 4294967168 }
  0x24   :  { %491 = dma.done.wait [#allocation7], 256  }
  0x25   :  { %492 = vsyncadd [#allocation7], 4294967040  ;;  %v500_v0 = vmov 0.0   ;;  %vm501_vm0 = vmmov 0   ;;  %vm66_vm1 = vcmask 261120   ;;  %v57_v1 = vld [vmem:[#allocation6] sm:$0xff]  ;;  %v147_v9 = vlaneseq }
  0x26   :  { %366 = vmatprep.subr.mxu0 %v500_v0  ;;  %368 = vmatprep.mubr.msk.f32.mxu0 %vm501_vm0, %v500_v0  ;;  %v56_v2 = vld [vmem:[#allocation3] sm:$0xff]  ;;  %v353_v4 = vld [vmem:[%s578_s2] ss:$0 sm:$0xff]  ;;  %vm149_vm2 = vcmask 64512   ;;  %vm319_vm13 = vcmask 0   ;;  %s502_s2 = smov [#allocation10]  }
  0x27   :  { %367 = vmatpush3.xpose.msk.msra.mxu0 %vm66_vm1, %v57_v1  ;;  %v59_v3 = vmul.f32 -2.0, %v56_v2  ;;  %v553_v10 = vand.u32 127, %v147_v9  ;;  %v143_v33 = vmul.f32 %v56_v2, %v56_v2  ;;  %v221_v45 = vld [vmem:[#allocation8] sm:$0xff]  ;;  %v306_v46 = vshrl.u32 %v147_v9, 7  ;;  %s339_s7 = sshll.u32 %s502_s2, 4  ;;  %s340_s7 = int_to_ptr.vmem [resolvable:$true] %s339_s7 }
  0x28   :  { %371 = vmatprep.subr.mxu1 %v221_v45  ;;  %s449_s8 = scalar_lea.vmem %s340_s7, 16  ;;  %s453_s9 = scalar_lea.vmem %s340_s7, 32 }
  0x29   :  { %v144_v35 = vsel %vm66_vm1, %v143_v33, 0.0  ;;  %372 = vmatpush3.msra.mxu1 %v221_v45  ;;  %vm307_vm8 = vcmp.lt.s32.totalorder %v306_v46, 4  ;;  %p450_p1 = scmp.ne.s32.totalorder %s340_s7, %s449_s8  ;;  %p454_p2 = scmp.lt.s32.totalorder %s340_s7, %s340_s7 }
  0x2a   :  { %369 = vmatmul.mubr.msk.f32.vlgmr.msra.gmra.mxu0 %vm66_vm1, %v59_v3  ;;  %v360_v56 = vsel %vm307_vm8, 1.0, %v500_v0  ;;  %p455_p3 = scmp.lt.s32.totalorder %s453_s9, %s449_s8 }
  0x2c   :  { %p456_p4 = por %p455_p3, %p454_p2 }
  0x2e   :  { %p457_p5 = pnand %p456_p4, %p450_p1 }
  0xea   :  { %v139_v5 = vpop.f32.mrf.mxu0 }
  0xeb   :  { %v140_v6 = vadd.f32 %v353_v4, %v139_v5 }
  0xec   :  { %v370_v7 = vpop.f32.mrf.mxu0 }
  0xed   :  { %v150_v8 = vsel %vm149_vm2, %v140_v6, inf }
  0xee   :  { %151 = vmin.xlane.f32.xlu0 %v150_v8 }
 0x177   :  { %v152_v11 = vpop.xlane.xlu0 %151 }
 0x178   :  { %vm153_vm3 = vcmp.le.f32.partialorder %v140_v6, %v152_v11 }
 0x179   :  { %v154_v12 = vsel %vm153_vm3, %v553_v10, 8 }
 0x17a   :  { %v155_v13 = vsel %vm149_vm2, %v154_v12, 2147483647 }
 0x17b   :  { %v157_v14 = vshra.s32 %v155_v13, 16  ;;  %v156_v16 = vand.u32 65535, %v155_v13 }
 0x17d   :  { %v159_v15 = vcvt.s32.f32 %v157_v14  ;;  %v158_v18 = vcvt.s32.f32 %v156_v16 }
 0x17f   :  { %160 = vmin.xlane.f32.xlu0 %v159_v15 }
 0x208   :  { %v161_v17 = vpop.xlane.xlu0 %160 }
 0x209   :  { %vm162_vm4 = vcmp.eq.f32.partialorder %v159_v15, %v161_v17  ;;  %v167_v20 = vcvt.f32.s32 %v161_v17 }
 0x20a   :  { %v163_v19 = vsel %vm162_vm4, %v158_v18, inf }
 0x20b   :  { %164 = vmin.xlane.f32.xlu1 %v163_v19  ;;  %v168_v22 = vshll.u32 %v167_v20, 16 }
 0x294   :  { %v165_v21 = vpop.xlane.xlu1 %164 }
 0x295   :  { %v166_v23 = vcvt.f32.s32 %v165_v21 }
 0x297   :  { %v169_v24 = vadd.s32 %v168_v22, %v166_v23 }
 0x299   :  { %vm170_vm5 = vcmp.eq.s32.totalorder %v553_v10, %v169_v24 }
 0x29a   :  { %v184_v25 = vsel %vm170_vm5, 1e+30, %v140_v6  ;;  %v356_v26 = vsel %vm170_vm5, 1.0, %v500_v0 }
 0x29b   :  { %v185_v27 = vsel %vm149_vm2, %v184_v25, inf  ;;  %173 = vst.msk [vmem:[#allocation2] sm:$0xff] %vm149_vm2, %v356_v26 }
 0x29c   :  { %186 = vmin.xlane.f32.xlu1 %v185_v27 }
 0x2a2   :  { %v219_v28 = vld [vmem:[#allocation2] sm:$0xff] }
 0x2a3   :  { %373 = vmatprep.mubr.msk.f32.mxu1 %vm149_vm2, %v219_v28 }
 0x325   :  { %v187_v29 = vpop.xlane.xlu1 %186 }
 0x326   :  { %vm188_vm6 = vcmp.le.f32.partialorder %v184_v25, %v187_v29 }
 0x327   :  { %v189_v30 = vsel %vm188_vm6, %v553_v10, 8 }
 0x328   :  { %v190_v31 = vsel %vm149_vm2, %v189_v30, 2147483647 }
 0x329   :  { %v192_v32 = vshra.s32 %v190_v31, 16  ;;  %v191_v36 = vand.u32 65535, %v190_v31 }
 0x32b   :  { %v194_v34 = vcvt.s32.f32 %v192_v32  ;;  %v193_v38 = vcvt.s32.f32 %v191_v36 }
 0x32d   :  { %195 = vmin.xlane.f32.xlu0 %v194_v34 }
 0x331   :  { %145 = vadd.xlane.f32.xlu0 %v144_v35 }
 0x3b6   :  { %v196_v37 = vpop.xlane.xlu0 %195 }
 0x3b7   :  { %vm197_vm7 = vcmp.eq.f32.partialorder %v194_v34, %v196_v37  ;;  %v202_v4 = vcvt.f32.s32 %v196_v37 }
 0x3b8   :  { %v198_v39 = vsel %vm197_vm7, %v193_v38, inf }
 0x3b9   :  { %199 = vmin.xlane.f32.xlu1 %v198_v39  ;;  %v203_v6 = vshll.u32 %v202_v4, 16 }
 0x3ba   :  { %v146_v40 = vpop.xlane.xlu0 %145 }
 0x3bb   :  { %v174_v41 = vadd.f32 %v152_v11, %v146_v40  ;;  %v209_v42 = vadd.f32 %v187_v29, %v146_v40 }
 0x3bd   :  { %v175_v43 = vmax.f32 %v174_v41, 0.0  ;;  %v210_v44 = vmax.f32 %v209_v42, 0.0 }
 0x3bf   :  { %385 = vrsqrt.f32 %v175_v43  ;;  %vm178_vm9 = vcmp.eq.f32.partialorder %v175_v43, inf  ;;  %v181_v50 = vand.u32 2147483648, %v175_v43  ;;  %vm213_vm10 = vcmp.eq.f32.partialorder %v210_v44, inf }
 0x3c0   :  { %387 = vrsqrt.f32 %v210_v44  ;;  %v216_v52 = vand.u32 2147483648, %v210_v44  ;;  %vm180_vm11 = vcmp.eq.f32.partialorder %v175_v43, 0.0  ;;  %vm215_vm12 = vcmp.eq.f32.partialorder %v210_v44, 0.0 }
 0x3cc   :  { %v386_v47 = vpop.eup %385 }
 0x3cd   :  { %v388_v48 = vpop.eup %387  ;;  %v177_v49 = vmul.f32 %v386_v47, %v175_v43 }
 0x3ce   :  { %v212_v51 = vmul.f32 %v388_v48, %v210_v44 }
 0x3cf   :  { %v179_v53 = vsel %vm178_vm9, %v175_v43, %v177_v49 }
 0x3d0   :  { %v182_v54 = vsel %vm180_vm11, %v181_v50, %v179_v53  ;;  %v214_v55 = vsel %vm213_vm10, %v210_v44, %v212_v51 }
 0x3d1   :  { %v217_v57 = vsel %vm215_vm12, %v216_v52, %v214_v55 }
 0x3d2   :  { %v218_v58 = vadd.f32 %v217_v57, %v182_v54 }
 0x3d4   :  { %v310_v59 = vmul.f32 %v360_v56, %v218_v58 }
 0x3d6   :  { %v311_v60 = vrot.slane %v310_v59, 4 }
 0x3d8   :  { %v312_v61 = vadd.f32 %v311_v60, %v310_v59 }
 0x3da   :  { %v313_v62 = vrot.slane %v312_v61, 2 }
 0x3dc   :  { %v314_v63 = vadd.f32 %v313_v62, %v312_v61 }
 0x3de   :  { %v315_v1 = vrot.slane %v314_v63, 1 }
 0x3e0   :  { %v316_v2 = vadd.f32 %v315_v1, %v314_v63 }
 0x3e2   :  { %v318_v3 = vmul.f32 0.25, %v316_v2 }
 0x3e4   :  { %320 = vst.msk [vmem:[#allocation10] sm:$0x1] %vm319_vm13, %v318_v3 }
 0x442   :  { %v200_v5 = vpop.xlane.xlu1 %199 }
 0x443   :  { %v201_v7 = vcvt.f32.s32 %v200_v5 }
 0x445   :  { %v204_v8 = vadd.s32 %v203_v6, %v201_v7 }
 0x447   :  { %vm205_vm14 = vcmp.eq.s32.totalorder %v553_v10, %v204_v8 }
 0x448   :  { %v357_v9 = vsel %vm205_vm14, 1.0, %v500_v0 }
 0x449   :  { %208 = vst.msk [vmem:[#allocation2 + $0x8] sm:$0xff] %vm149_vm2, %v357_v9 }
 0x450   :  { %v220_v11 = vld [vmem:[#allocation2 + $0x8] sm:$0xff] }
 0x451   :  { %374 = vmatmul.mubr.msk.f32.vlgmr.msra.gmra.mxu1 %vm149_vm2, %v220_v11 }
 0x452   :  { %460 = shalt.err (!%p457_p5)
}
 0x453   :  { %342 = dma.vmem_to_hbm [thread:$0]  %s340_s7, 16, %s581_s5, [#allocation11]  }
 0x454   :  { %s503_s12 = smov [#allocation9]  }
 0x455   :  { %s326_s13 = sshll.u32 %s503_s12, 4  ;;  %s327_s13 = int_to_ptr.vmem [resolvable:$true] %s326_s13 }
 0x456   :  { %s469_s14 = scalar_lea.vmem %s327_s13, 256  ;;  %p474_p7 = scmp.lt.s32.totalorder %s327_s13, %s327_s13 }
 0x457   :  { %p470_p6 = scmp.ne.s32.totalorder %s327_s13, %s469_s14  ;;  %p475_p8 = scmp.lt.s32.totalorder %s469_s14, %s469_s14 }
 0x459   :  { %p476_p9 = por %p475_p8, %p474_p7 }
 0x45b   :  { %p477_p10 = pnand %p476_p9, %p470_p6 }
 0x511   :  { %v375_v0 = vpop.f32.mrf.mxu1 }
 0x512   :  { %304 = vst [vmem:[#allocation9 + $0x8] sm:$0xff] %v375_v0 }
 0x513   :  { %v294_v10 = vpop.f32.mrf.mxu1 }
 0x514   :  { %303 = vst [vmem:[#allocation9] sm:$0xff] %v294_v10 }
 0x515   :  { %480 = shalt.err (!%p477_p10)
}
 0x516   :  { %s504_s15 = smov 128   ;;  %s505_s16 = smov 8  }
 0x517   :  { %332 = dma.vmem_to_hbm [thread:$0]  %s327_s13, 256, %s580_s4, [#allocation5], %s504_s15, %s504_s15, %s505_s16  }
 0x518   :  { %493 = dma.done.wait [#allocation5], 256  }
 0x519   :  { %494 = vsyncadd [#allocation5], 4294967040 }
 0x51a   :  { %495 = dma.done.wait [#allocation11], 16  }
 0x51b   :  { %496 = vsyncadd [#allocation11], 4294967280 }
 0x51c   :  { %349 = vsyncpa [#allocation4], 1 }
 0x51d   :  { %350 = vsyncpa [#allocation7], 1 }
 0x51e   :  { %351 = vsyncpa [#allocation5], 1 }
 0x51f   :  { %352 = vsyncpa [#allocation11], 1 }

</bundles_post_ra>
